<compile_context>
chip_gen: v6e
topology: v6e:2x2x1
jax: 0.10.0
libtpu: 0.0.40
codegen_flags: <defaults>
</compile_context>

<pallas_src>
import functools

import jax
import jax.numpy as jnp
import numpy as np
from jax.experimental import pallas as pl
from jax.experimental.pallas import tpu as pltpu

BN_EPS = 1e-5


def _resblock_kernel(x_ref, t1_ref, t2_ref, s1_ref, b1_ref, s2_ref, b2_ref,
                     out_ref):
    # x_ref  : (1, H+2, L) f32  vertically zero-padded input, lanes = (b, w, c)
    #                            packed, L = lane_groups * W * C
    # t1_ref : (3*L, L)    bf16 conv1 weights: kw-Toeplitz (boundary taps
    #                            dropped) + lane-group block-diag, the 3 kh
    #                            taps stacked along the contraction dim
    # t2_ref : (3*L, L)    bf16 conv2 weights, same folding
    # s*/b*  : (1, L)      f32  folded BatchNorm scale / bias (tiled over b, w)
    # out_ref: (1, H, L)   bf16 lane-dense output
    H = out_ref.shape[1]
    L = out_ref.shape[2]

    x = x_ref[0]                                            # (H+2, L) f32

    # ---- conv1: fold the 3 kh taps into K -> one MXU matmul ----
    xcat = jnp.concatenate([x[0:H], x[1:H + 1], x[2:H + 2]],
                           axis=-1).astype(jnp.bfloat16)    # (H, 3L)
    acc1 = jnp.dot(xcat, t1_ref[...], preferred_element_type=jnp.float32)

    # ---- BN1 + ReLU in f32 on the VPU ----
    y1 = jnp.maximum(acc1 * s1_ref[...] + b1_ref[...], 0.0)  # (H, L) f32

    # ---- conv2: same kh fold; vertical zero pad expressed as zero rows in the
    # shifted views (values only -- no scratch store/reload round trip) ----
    zrow = jnp.zeros((1, L), jnp.float32)
    ypad = jnp.concatenate([zrow, y1, zrow], axis=0)        # (H+2, L) f32
    ycat = jnp.concatenate([ypad[0:H], ypad[1:H + 1], ypad[2:H + 2]],
                           axis=-1).astype(jnp.bfloat16)    # (H, 3L)
    acc2 = jnp.dot(ycat, t2_ref[...], preferred_element_type=jnp.float32)

    # ---- BN2 + exact f32 identity residual (aligned slice of the input) ----
    res = x[1:H + 1, :]
    out = jnp.maximum(acc2 * s2_ref[...] + b2_ref[...] + res, 0.0)
    out_ref[0] = out.astype(out_ref.dtype)


# ----------------------------------------------------------------------------
# One-time parameter folding (outside the per-forward path).
# ----------------------------------------------------------------------------

def _fold_kw_taps(w_hwio, w_out):
    """Fold the 3 horizontal (kw) taps of a 3x3 conv into per-kh block-Toeplitz
    matrices over the lane-packed (w, c) layout.  No explicit horizontal zero
    pad in the data: out-of-range boundary taps are simply dropped."""
    ci, co = w_hwio.shape[2], w_hwio.shape[3]
    eye = jnp.eye(w_out, dtype=jnp.float32)
    mats = []
    for kh in range(3):
        m = jnp.zeros((w_out * ci, w_out * co), jnp.float32)
        for kw in range(3):
            blk = jnp.kron(eye, w_hwio[kh, kw].astype(jnp.float32))
            s = kw - 1                      # output col w reads input col w + s
            if s == 0:
                m = m + blk
            elif s > 0:
                m = m.at[s * ci:].add(blk[:(w_out - s) * ci])
            else:
                m = m.at[:(w_out + s) * ci].add(blk[(-s) * ci:])
        mats.append(m)
    return jnp.stack(mats)                  # (3, W*ci, W*co)


def _pack_conv_weights(w_oihw, w_out, lane_groups):
    """OIHW conv weight -> (3*lg*W*Cin, lg*W*Cout) bf16 matrix: kw taps folded
    into a block-Toeplitz, lane-group batch packing as a block-diagonal, and
    the 3 kh taps stacked along the contraction dim."""
    w_hwio = jnp.transpose(w_oihw, (2, 3, 1, 0))
    taps = _fold_kw_taps(w_hwio, w_out)                      # (3, W*ci, W*co)
    eye_g = jnp.eye(lane_groups, dtype=jnp.float32)
    packed = jnp.concatenate([jnp.kron(eye_g, taps[kh]) for kh in range(3)],
                             axis=0)
    return packed.astype(jnp.bfloat16)


def _fold_bn(gamma, beta, mean, var, reps):
    scale = (gamma / jnp.sqrt(var + BN_EPS)).astype(jnp.float32)
    bias = (beta - mean * scale).astype(jnp.float32)
    return (jnp.tile(scale, reps).reshape(1, -1),
            jnp.tile(bias, reps).reshape(1, -1))


def choose_lane_groups(batch, width, channels):
    """Pack enough batch elements into lanes to reach a 128-wide lane dim."""
    lg = 1
    while width * channels * lg < 128 and batch % (lg * 2) == 0:
        lg *= 2
    return lg


def prepare_resnet_block_params(w1_oihw, w2_oihw, bn1_params, bn2_params, *,
                                width, lane_groups):
    cout, cin = w1_oihw.shape[0], w1_oihw.shape[1]
    assert cin == cout, "identity-residual path requires in_planes == planes"
    t1 = _pack_conv_weights(w1_oihw, width, lane_groups)
    t2 = _pack_conv_weights(w2_oihw, width, lane_groups)
    s1, b1 = _fold_bn(*bn1_params, reps=lane_groups * width)
    s2, b2 = _fold_bn(*bn2_params, reps=lane_groups * width)
    return (t1, t2, s1, b1, s2, b2)


# ----------------------------------------------------------------------------
# Jitted forward: layout plumbing + pallas_call.
# ----------------------------------------------------------------------------

@functools.partial(jax.jit, static_argnames=("out_dtype",))
def resnet_block_forward(x_nchw, params, out_dtype=jnp.bfloat16):
    """ResnetBlock forward (stride=1, identity residual).  x in NCHW."""
    t1, t2, s1, b1, s2, b2 = params
    N, C, H, W = x_nchw.shape
    L = s1.shape[-1]
    lg = L // (W * C)
    assert lg * W * C == L and N % lg == 0
    G = N // lg

    # Layout plumbing: NCHW -> lane-packed (b, w, c), vertical zero pad only.
    x = jnp.transpose(x_nchw, (0, 2, 3, 1)).astype(jnp.float32)     # NHWC
    x2d = (x.reshape(G, lg, H, W * C)
             .transpose(0, 2, 1, 3)
             .reshape(G, H, L))
    x2d = jnp.pad(x2d, ((0, 0), (1, 1), (0, 0)))                    # (G, H+2, L)

    out2d = pl.pallas_call(
        _resblock_kernel,
        out_shape=jax.ShapeDtypeStruct((G, H, L), out_dtype),
        grid_spec=pltpu.PrefetchScalarGridSpec(
            num_scalar_prefetch=0,
            grid=(G,),
            in_specs=[
                pl.BlockSpec((1, H + 2, L), lambda g: (g, 0, 0)),
                pl.BlockSpec((3 * L, L), lambda g: (0, 0)),
                pl.BlockSpec((3 * L, L), lambda g: (0, 0)),
                pl.BlockSpec((1, L), lambda g: (0, 0)),
                pl.BlockSpec((1, L), lambda g: (0, 0)),
                pl.BlockSpec((1, L), lambda g: (0, 0)),
                pl.BlockSpec((1, L), lambda g: (0, 0)),
            ],
            out_specs=pl.BlockSpec((1, H, L), lambda g: (g, 0, 0)),
        ),
        compiler_params=pltpu.CompilerParams(
            dimension_semantics=("parallel",),      # lane-groups are independent
            vmem_limit_bytes=32 * 1024 * 1024,      # plenty at demo size; raise
                                                    # on v6e when scaling blocks
        ),
    )(x2d, t1, t2, s1, b1, s2, b2)

    # Unpack lanes back to NCHW.
    out = (out2d.reshape(G, H, lg, W, C)
                .transpose(0, 2, 1, 3, 4)
                .reshape(N, H, W, C))
    return jnp.transpose(out, (0, 3, 1, 2))


# ----------------------------------------------------------------------------
# Pure-JAX references.
# ----------------------------------------------------------------------------

def _reference_forward(x, w1, w2, bn1, bn2, mxu_dtype=jnp.float32):
    """Mirrors the PyTorch module in eval mode (NCHW).  mxu_dtype=bfloat16
    mirrors the kernel's bf16 MXU operands (f32 accumulation / BN / residual)."""
    def conv(inp, w):
        return jax.lax.conv_general_dilated(
            inp.astype(mxu_dtype), w.astype(mxu_dtype), (1, 1), ((1, 1), (1, 1)),
            dimension_numbers=("NCHW", "OIHW", "NCHW"),
            preferred_element_type=jnp.float32)

    def bn(inp, p):
        gamma, beta, mean, var = p
        scale = gamma / jnp.sqrt(var + BN_EPS)
        bias = beta - mean * scale
        return inp * scale[None, :, None, None] + bias[None, :, None, None]

    out = jax.nn.relu(bn(conv(x, w1), bn1))
    out = bn(conv(out, w2), bn2)
    return jax.nn.relu(out + x.astype(jnp.float32))   # identity residual in f32


if __name__ == "__main__":
    # Small deterministic problem: batch=2, channels=4, spatial=16x16, stride=1.
    N, C, H, W = 2, 4, 16, 16
    key = jax.random.PRNGKey(0)
    k = jax.random.split(key, 11)

    x = jax.random.normal(k[0], (N, C, H, W), jnp.float32)
    conv1_w = 0.2 * jax.random.normal(k[1], (C, C, 3, 3), jnp.float32)   # OIHW
    conv2_w = 0.2 * jax.random.normal(k[2], (C, C, 3, 3), jnp.float32)   # OIHW

    bn1 = (1.0 + 0.1 * jax.random.normal(k[3], (C,), jnp.float32),       # gamma
           0.1 * jax.random.normal(k[4], (C,), jnp.float32),             # beta
           0.1 * jax.random.normal(k[5], (C,), jnp.float32),             # mean
           1.0 + 0.1 * jax.nn.softplus(jax.random.normal(k[6], (C,), jnp.float32)))
    bn2 = (1.0 + 0.1 * jax.random.normal(k[7], (C,), jnp.float32),
           0.1 * jax.random.normal(k[8], (C,), jnp.float32),
           0.1 * jax.random.normal(k[9], (C,), jnp.float32),
           1.0 + 0.1 * jax.nn.softplus(jax.random.normal(k[10], (C,), jnp.float32)))

    # One-time parameter folding (hoisted out of the per-forward path).
    lg = choose_lane_groups(N, W, C)
    params = prepare_resnet_block_params(conv1_w, conv2_w, bn1, bn2,
                                         width=W, lane_groups=lg)

    out = jax.block_until_ready(resnet_block_forward(x, params))
    out_f32 = np.asarray(out.astype(jnp.float32))

    # Tight structural check vs. a reference mirroring the kernel's bf16 MXU
    # operands (f32 accumulation / BN / residual math, f32 skip connection).
    ref_bf16 = jax.block_until_ready(
        _reference_forward(x, conv1_w, conv2_w, bn1, bn2, mxu_dtype=jnp.bfloat16))
    np.testing.assert_allclose(out_f32, np.asarray(ref_bf16), rtol=2e-2, atol=2e-2)

    # Loose check vs. the original full-f32 module semantics (tolerance driven
    # by the bf16 MXU inputs / bf16 output writeback).
    ref_f32 = jax.block_until_ready(
        _reference_forward(x, conv1_w, conv2_w, bn1, bn2, mxu_dtype=jnp.float32))
    np.testing.assert_allclose(out_f32, np.asarray(ref_f32), rtol=2e-1, atol=2e-1)

    print("KERNEL_OK")
</pallas_src>

<mosaic_0001>
module attributes {stable_mosaic.version = 11 : i64} {
  func.func @_resblock_kernel(%arg0: i32, %arg1: memref<1x18x128xf32, #tpu.memory_space<vmem>>, %arg2: memref<384x128xbf16, #tpu.memory_space<vmem>>, %arg3: memref<384x128xbf16, #tpu.memory_space<vmem>>, %arg4: memref<1x128xf32, #tpu.memory_space<vmem>>, %arg5: memref<1x128xf32, #tpu.memory_space<vmem>>, %arg6: memref<1x128xf32, #tpu.memory_space<vmem>>, %arg7: memref<1x128xf32, #tpu.memory_space<vmem>>, %arg8: memref<1x16x128xbf16, #tpu.memory_space<vmem>>) attributes {dimension_semantics = [#tpu.dimension_semantics<parallel>], iteration_bounds = array<i64: 1>, scalar_prefetch = 0 : i64, scratch_operands = 0 : i64, tpu.core_type = #tpu.core_type<tc>, window_params = [{transform_indices = @transform_0, window_bounds = array<i64: 1, 18, 128>}, {pipeline_mode = #tpu.pipeline_mode<synchronous>, transform_indices = @transform_1, window_bounds = array<i64: 384, 128>}, {pipeline_mode = #tpu.pipeline_mode<synchronous>, transform_indices = @transform_2, window_bounds = array<i64: 384, 128>}, {pipeline_mode = #tpu.pipeline_mode<synchronous>, transform_indices = @transform_3, window_bounds = array<i64: 1, 128>}, {pipeline_mode = #tpu.pipeline_mode<synchronous>, transform_indices = @transform_4, window_bounds = array<i64: 1, 128>}, {pipeline_mode = #tpu.pipeline_mode<synchronous>, transform_indices = @transform_5, window_bounds = array<i64: 1, 128>}, {pipeline_mode = #tpu.pipeline_mode<synchronous>, transform_indices = @transform_6, window_bounds = array<i64: 1, 128>}, {transform_indices = @transform_7, window_bounds = array<i64: 1, 16, 128>}]} {
    %c0 = arith.constant 0 : index
    %c0_0 = arith.constant 0 : index
    %c0_1 = arith.constant 0 : index
    %0 = vector.load %arg1[%c0, %c0_0, %c0_1] : memref<1x18x128xf32, #tpu.memory_space<vmem>>, vector<1x18x128xf32>
    %1 = vector.shape_cast %0 : vector<1x18x128xf32> to vector<18x128xf32>
    %2 = vector.extract_strided_slice %1 {offsets = [0, 0], sizes = [16, 128], strides = [1, 1]} : vector<18x128xf32> to vector<16x128xf32>
    %3 = vector.extract_strided_slice %1 {offsets = [1, 0], sizes = [16, 128], strides = [1, 1]} : vector<18x128xf32> to vector<16x128xf32>
    %4 = vector.extract_strided_slice %1 {offsets = [2, 0], sizes = [16, 128], strides = [1, 1]} : vector<18x128xf32> to vector<16x128xf32>
    %5 = tpu.concatenate %2, %3, %4 in 1 : vector<16x128xf32>, vector<16x128xf32>, vector<16x128xf32> -> vector<16x384xf32>
    %6 = arith.truncf %5 : vector<16x384xf32> to vector<16x384xbf16>
    %c0_2 = arith.constant 0 : index
    %c0_3 = arith.constant 0 : index
    %7 = vector.load %arg2[%c0_2, %c0_3] : memref<384x128xbf16, #tpu.memory_space<vmem>>, vector<384x128xbf16>
    %cst = arith.constant dense<0.000000e+00> : vector<16x128xf32>
    %8 = tpu.matmul %6, %7, %cst {dimension_numbers = #tpu.dot_dimension_numbers<[1], [0], [0], [1], [0, 0, 1, 1], [], []>} : vector<16x384xbf16>, vector<384x128xbf16>, vector<16x128xf32> -> vector<16x128xf32>
    %c0_4 = arith.constant 0 : index
    %c0_5 = arith.constant 0 : index
    %9 = vector.load %arg4[%c0_4, %c0_5] : memref<1x128xf32, #tpu.memory_space<vmem>>, vector<1x128xf32>
    %10 = vector.broadcast %9 : vector<1x128xf32> to vector<16x128xf32>
    %11 = arith.mulf %8, %10 : vector<16x128xf32>
    %c0_6 = arith.constant 0 : index
    %c0_7 = arith.constant 0 : index
    %12 = vector.load %arg5[%c0_6, %c0_7] : memref<1x128xf32, #tpu.memory_space<vmem>>, vector<1x128xf32>
    %13 = vector.broadcast %12 : vector<1x128xf32> to vector<16x128xf32>
    %14 = arith.addf %11, %13 : vector<16x128xf32>
    %cst_8 = arith.constant 0.000000e+00 : f32
    %15 = vector.broadcast %cst_8 : f32 to vector<16x128xf32>
    %16 = arith.maximumf %14, %15 : vector<16x128xf32>
    %cst_9 = arith.constant 0.000000e+00 : f32
    %17 = vector.broadcast %cst_9 : f32 to vector<1x128xf32>
    %18 = tpu.concatenate %17, %16, %17 in 0 : vector<1x128xf32>, vector<16x128xf32>, vector<1x128xf32> -> vector<18x128xf32>
    %19 = vector.extract_strided_slice %18 {offsets = [0, 0], sizes = [16, 128], strides = [1, 1]} : vector<18x128xf32> to vector<16x128xf32>
    %20 = vector.extract_strided_slice %18 {offsets = [1, 0], sizes = [16, 128], strides = [1, 1]} : vector<18x128xf32> to vector<16x128xf32>
    %21 = vector.extract_strided_slice %18 {offsets = [2, 0], sizes = [16, 128], strides = [1, 1]} : vector<18x128xf32> to vector<16x128xf32>
    %22 = tpu.concatenate %19, %20, %21 in 1 : vector<16x128xf32>, vector<16x128xf32>, vector<16x128xf32> -> vector<16x384xf32>
    %23 = arith.truncf %22 : vector<16x384xf32> to vector<16x384xbf16>
    %c0_10 = arith.constant 0 : index
    %c0_11 = arith.constant 0 : index
    %24 = vector.load %arg3[%c0_10, %c0_11] : memref<384x128xbf16, #tpu.memory_space<vmem>>, vector<384x128xbf16>
    %cst_12 = arith.constant dense<0.000000e+00> : vector<16x128xf32>
    %25 = tpu.matmul %23, %24, %cst_12 {dimension_numbers = #tpu.dot_dimension_numbers<[1], [0], [0], [1], [0, 0, 1, 1], [], []>} : vector<16x384xbf16>, vector<384x128xbf16>, vector<16x128xf32> -> vector<16x128xf32>
    %26 = vector.extract_strided_slice %1 {offsets = [1, 0], sizes = [16, 128], strides = [1, 1]} : vector<18x128xf32> to vector<16x128xf32>
    %c0_13 = arith.constant 0 : index
    %c0_14 = arith.constant 0 : index
    %27 = vector.load %arg6[%c0_13, %c0_14] : memref<1x128xf32, #tpu.memory_space<vmem>>, vector<1x128xf32>
    %28 = vector.broadcast %27 : vector<1x128xf32> to vector<16x128xf32>
    %29 = arith.mulf %25, %28 : vector<16x128xf32>
    %c0_15 = arith.constant 0 : index
    %c0_16 = arith.constant 0 : index
    %30 = vector.load %arg7[%c0_15, %c0_16] : memref<1x128xf32, #tpu.memory_space<vmem>>, vector<1x128xf32>
    %31 = vector.broadcast %30 : vector<1x128xf32> to vector<16x128xf32>
    %32 = arith.addf %29, %31 : vector<16x128xf32>
    %33 = arith.addf %32, %26 : vector<16x128xf32>
    %cst_17 = arith.constant 0.000000e+00 : f32
    %34 = vector.broadcast %cst_17 : f32 to vector<16x128xf32>
    %35 = arith.maximumf %33, %34 : vector<16x128xf32>
    %36 = arith.truncf %35 : vector<16x128xf32> to vector<16x128xbf16>
    %c0_18 = arith.constant 0 : index
    %c0_19 = arith.constant 0 : index
    %c0_20 = arith.constant 0 : index
    %37 = vector.load %arg8[%c0_18, %c0_19, %c0_20] : memref<1x16x128xbf16, #tpu.memory_space<vmem>>, vector<1x16x128xbf16>
    %38 = vector.shape_cast %37 : vector<1x16x128xbf16> to vector<16x128xbf16>
    %39 = vector.shape_cast %36 : vector<16x128xbf16> to vector<1x16x128xbf16>
    tpu.vector_store %arg8[%c0_18, %c0_19, %c0_20], %39 {strides = array<i32>} : memref<1x16x128xbf16, #tpu.memory_space<vmem>>, vector<1x16x128xbf16>,
    return
  }
  func.func @transform_0(%arg0: i32) -> (i32, i32, i32) {
    %c0_i32 = arith.constant 0 : i32
    %c0_i32_0 = arith.constant 0 : i32
    %c0_i32_1 = arith.constant 0 : i32
    return %arg0, %c0_i32, %c0_i32_0 : i32, i32, i32
  }
  func.func @transform_1(%arg0: i32) -> (i32, i32) {
    %c0_i32 = arith.constant 0 : i32
    %c0_i32_0 = arith.constant 0 : i32
    %c0_i32_1 = arith.constant 0 : i32
    return %c0_i32, %c0_i32_0 : i32, i32
  }
  func.func @transform_2(%arg0: i32) -> (i32, i32) {
    %c0_i32 = arith.constant 0 : i32
    %c0_i32_0 = arith.constant 0 : i32
    %c0_i32_1 = arith.constant 0 : i32
    return %c0_i32, %c0_i32_0 : i32, i32
  }
  func.func @transform_3(%arg0: i32) -> (i32, i32) {
    %c0_i32 = arith.constant 0 : i32
    %c0_i32_0 = arith.constant 0 : i32
    %c0_i32_1 = arith.constant 0 : i32
    return %c0_i32, %c0_i32_0 : i32, i32
  }
  func.func @transform_4(%arg0: i32) -> (i32, i32) {
    %c0_i32 = arith.constant 0 : i32
    %c0_i32_0 = arith.constant 0 : i32
    %c0_i32_1 = arith.constant 0 : i32
    return %c0_i32, %c0_i32_0 : i32, i32
  }
  func.func @transform_5(%arg0: i32) -> (i32, i32) {
    %c0_i32 = arith.constant 0 : i32
    %c0_i32_0 = arith.constant 0 : i32
    %c0_i32_1 = arith.constant 0 : i32
    return %c0_i32, %c0_i32_0 : i32, i32
  }
  func.func @transform_6(%arg0: i32) -> (i32, i32) {
    %c0_i32 = arith.constant 0 : i32
    %c0_i32_0 = arith.constant 0 : i32
    %c0_i32_1 = arith.constant 0 : i32
    return %c0_i32, %c0_i32_0 : i32, i32
  }
  func.func @transform_7(%arg0: i32) -> (i32, i32, i32) {
    %c0_i32 = arith.constant 0 : i32
    %c0_i32_0 = arith.constant 0 : i32
    %c0_i32_1 = arith.constant 0 : i32
    return %arg0, %c0_i32, %c0_i32_0 : i32, i32, i32
  }
}

</mosaic_0001>

<bundles_post_ra>
// kernel: resnet_block_forward.1
= control target key start
LH: loop header
LB: loop body
LE: loop exit
PB: predicated region body
PF: predicated region fallthrough
CT: control target
= control target key end

     0   :  { %v904_v0 = vmov 0.0   ;;  %vm905_vm0 = vmmov 0   ;;  %vm33_vm1 = vcmask 1046528   ;;  %vm41_vm2 = vcmask 1045504   ;;  %s1151_s1 = inlined_call_operand.vmem [shape: bf16[384,128], index: 1, kind: input, shape index: {}]   ;;  %s1152_s0 = inlined_call_operand.vmem [shape: f32[1,18,128], index: 0, kind: input, shape index: {}]   ;;  %s1153_s2 = inlined_call_operand.vmem [shape: bf16[384,128], index: 2, kind: input, shape index: {}]   ;;  %s1154_s3 = inlined_call_operand.vmem [shape: f32[1,128], index: 3, kind: input, shape index: {}]   ;;  %s1155_s4 = inlined_call_operand.vmem [shape: f32[1,128], index: 4, kind: input, shape index: {}]   ;;  %s1156_s5 = inlined_call_operand.vmem [shape: f32[1,128], index: 5, kind: input, shape index: {}]   ;;  %s1157_s6 = inlined_call_operand.vmem [shape: f32[1,128], index: 6, kind: input, shape index: {}]   ;;  %s1158_s7 = inlined_call_operand.vmem [shape: bf16[1,16,128], index: 7, kind: output, shape index: {}]  }
   0x1   :  { %813 = vmatprep.subr.bf16.mxu1 %v904_v0  ;;  %v856_v1 = vld [vmem:[%s1151_s1 + $0x78] sm:$0xff]   ;;  %829 = vmatprep.mubr.msk.bf16.mxu1 %vm905_vm0, %v904_v0  ;;  %v859_v4 = vld [vmem:[%s1151_s1 + $0x70] sm:$0xff]   ;;  %v862_v7 = vld [vmem:[%s1151_s1 + $0x68] sm:$0xff]   ;;  %vm348_vm3 = vcmask 1040384   ;;  %vm906_vm5 = vmmov 1  }
   0x2   :  { %v857_v2 = vld [vmem:[%s1151_s1 + $0xb8] sm:$0xff]   ;;  %751 = vmatprep.subr.bf16.mxu0 %v856_v1  ;;  %v860_v5 = vld [vmem:[%s1151_s1 + $0xb0] sm:$0xff]   ;;  %v863_v8 = vld [vmem:[%s1151_s1 + $0xa8] sm:$0xff]  }
   0x3   :  { %v858_v3 = vld [vmem:[%s1151_s1 + $0x38] sm:$0xff]   ;;  %814 = vmatpush3.bf16.msra.mxu1 %v857_v2  ;;  %v861_v6 = vld [vmem:[%s1151_s1 + $0x30] sm:$0xff]   ;;  %v864_v9 = vld [vmem:[%s1151_s1 + $0x28] sm:$0xff]  }
   0x4   :  { %752 = vmatpush3.bf16.msra.mxu0 %v858_v3  ;;  %815 = vmatprep.subr.bf16.mxu1 %v904_v0  ;;  %v865_v10 = vld [vmem:[%s1151_s1 + $0x60] sm:$0xff]   ;;  %v868_v13 = vld [vmem:[%s1151_s1 + $0x58] sm:$0xff]   ;;  %v871_v16 = vld [vmem:[%s1151_s1 + $0x50] sm:$0xff]  }
   0x5   :  { %753 = vmatprep.subr.bf16.mxu0 %v859_v4  ;;  %v866_v11 = vld [vmem:[%s1151_s1 + $0xa0] sm:$0xff]   ;;  %v869_v14 = vld [vmem:[%s1151_s1 + $0x98] sm:$0xff]   ;;  %v872_v17 = vld [vmem:[%s1151_s1 + $0x90] sm:$0xff]  }
   0x6   :  { %v867_v12 = vld [vmem:[%s1151_s1 + $0x20] sm:$0xff]   ;;  %v870_v15 = vld [vmem:[%s1151_s1 + $0x18] sm:$0xff]   ;;  %v873_v18 = vld [vmem:[%s1151_s1 + $0x10] sm:$0xff]  }
   0x7   :  { %816 = vmatpush3.bf16.msra.mxu1 %v860_v5  ;;  %v874_v19 = vld [vmem:[%s1151_s1 + $0x48] sm:$0xff]   ;;  %v877_v22 = vld [vmem:[%s1151_s1 + $0x40] sm:$0xff]   ;;  %v29_v25 = vld [vmem:[%s1152_s0 + $0x10] sm:$0x3] }
   0x8   :  { %754 = vmatpush3.bf16.msra.mxu0 %v861_v6  ;;  %817 = vmatprep.subr.bf16.mxu1 %v904_v0  ;;  %v875_v20 = vld [vmem:[%s1151_s1 + $0x88] sm:$0xff]   ;;  %v27_v23 = vld [vmem:[%s1152_s0] sm:$0xff]  ;;  %v37_v28 = vrot.slane %v29_v25, 1  ;;  %v45_v29 = vrot.slane %v29_v25, 2  ;;  %v880_v39 = vld [vmem:[%s1153_s2 + $0x78] sm:$0xff]  }
   0x9   :  { %755 = vmatprep.subr.bf16.mxu0 %v862_v7  ;;  %v876_v21 = vld [vmem:[%s1151_s1 + $0x8] sm:$0xff]   ;;  %v34_v26 = vrot.slane %v27_v23, 1  ;;  %v878_v30 = vld [vmem:[%s1151_s1 + $0x80] sm:$0xff]   ;;  %v42_v32 = vrot.slane %v27_v23, 2  ;;  %v881_v40 = vld [vmem:[%s1153_s2 + $0xb8] sm:$0xff]  }
   0xa   :  { %v28_v24 = vld [vmem:[%s1152_s0 + $0x8] sm:$0xff]  ;;  %v879_v31 = vld [vmem:[%s1151_s1] sm:$0xff]   ;;  %v882_v42 = vld [vmem:[%s1153_s2 + $0x38] sm:$0xff]  }
   0xb   :  { %818 = vmatpush3.bf16.msra.mxu1 %v863_v8  ;;  %v35_v27 = vrot.slane %v28_v24, 1  ;;  %v43_v33 = vrot.slane %v28_v24, 2  ;;  %v49_v43 = vpack.c.bf16 %v28_v24, %v27_v23  ;;  %v883_v44 = vld [vmem:[%s1153_s2 + $0x70] sm:$0xff]   ;;  %v886_v47 = vld [vmem:[%s1153_s2 + $0x68] sm:$0xff]   ;;  %v889_v50 = vld [vmem:[%s1153_s2 + $0x60] sm:$0xff]  }
   0xc   :  { %756 = vmatpush3.bf16.msra.mxu0 %v864_v9  ;;  %819 = vmatprep.subr.bf16.mxu1 %v904_v0  ;;  %v884_v45 = vld [vmem:[%s1153_s2 + $0xb0] sm:$0xff]   ;;  %v887_v48 = vld [vmem:[%s1153_s2 + $0xa8] sm:$0xff]   ;;  %v890_v51 = vld [vmem:[%s1153_s2 + $0xa0] sm:$0xff]  }
   0xd   :  { %757 = vmatprep.subr.bf16.mxu0 %v865_v10  ;;  %v1038_v34 = vsel %vm33_vm1, %v34_v26, %v35_v27  ;;  %v1041_v35 = vsel %vm33_vm1, %v35_v27, %v37_v28  ;;  %v44_v37 = vsel %vm41_vm2, %v42_v32, %v43_v33  ;;  %v46_v38 = vsel %vm41_vm2, %v43_v33, %v45_v29  ;;  %v885_v46 = vld [vmem:[%s1153_s2 + $0x30] sm:$0xff]   ;;  %v888_v49 = vld [vmem:[%s1153_s2 + $0x28] sm:$0xff]   ;;  %v891_v52 = vld [vmem:[%s1153_s2 + $0x20] sm:$0xff]  }
   0xe   :  { %v50_v36 = vpack.c.bf16 %v1041_v35, %v1038_v34  ;;  %v51_v41 = vpack.c.bf16 %v46_v38, %v44_v37  ;;  %v892_v53 = vld [vmem:[%s1153_s2 + $0x58] sm:$0xff]   ;;  %v895_v56 = vld [vmem:[%s1153_s2 + $0x50] sm:$0xff]   ;;  %v898_v59 = vld [vmem:[%s1153_s2 + $0x48] sm:$0xff]  }
   0xf   :  { %820 = vmatpush3.bf16.msra.mxu1 %v866_v11  ;;  %v893_v54 = vld [vmem:[%s1153_s2 + $0x98] sm:$0xff]   ;;  %v896_v57 = vld [vmem:[%s1153_s2 + $0x90] sm:$0xff]   ;;  %v899_v60 = vld [vmem:[%s1153_s2 + $0x88] sm:$0xff]  }
  0x10   :  { %758 = vmatpush3.bf16.msra.mxu0 %v867_v12  ;;  %821 = vmatprep.subr.bf16.mxu1 %v904_v0  ;;  %v894_v55 = vld [vmem:[%s1153_s2 + $0x18] sm:$0xff]   ;;  %v897_v58 = vld [vmem:[%s1153_s2 + $0x10] sm:$0xff]   ;;  %v900_v61 = vld [vmem:[%s1153_s2 + $0x8] sm:$0xff]  }
  0x11   :  { %759 = vmatprep.subr.bf16.mxu0 %v868_v13  ;;  %276 = vmatprep.mubr.bf16.mxu0 %v50_v36  ;;  %v901_v62 = vld [vmem:[%s1153_s2 + $0x40] sm:$0xff]   ;;  %vm736_vm4 = vmneg %vm348_vm3 }
  0x12   :  { %v902_v63 = vld [vmem:[%s1153_s2 + $0x80] sm:$0xff]   ;;  %vm737_vm6 = vmpackc.low %vm906_vm5, %vm736_vm4 }
  0x13   :  { %822 = vmatpush3.bf16.msra.mxu1 %v869_v14  ;;  %v903_v1 = vld [vmem:[%s1153_s2] sm:$0xff]  }
  0x14   :  { %760 = vmatpush3.bf16.msra.mxu0 %v870_v15  ;;  %823 = vmatprep.subr.bf16.mxu1 %v904_v0  ;;  %v710_v7 = vld [vmem:[%s1154_s3] ss:$0 sm:$0xff] }
  0x15   :  { %761 = vmatprep.subr.bf16.mxu0 %v871_v16  ;;  %v711_v11 = vld [vmem:[%s1155_s4] ss:$0 sm:$0xff] }
  0x17   :  { %824 = vmatpush3.bf16.msra.mxu1 %v872_v17 }
  0x18   :  { %762 = vmatpush3.bf16.msra.mxu0 %v873_v18  ;;  %825 = vmatprep.subr.bf16.mxu1 %v904_v0 }
  0x19   :  { %763 = vmatprep.subr.bf16.mxu0 %v874_v19 }
  0x1b   :  { %826 = vmatpush3.bf16.msra.mxu1 %v875_v20 }
  0x1c   :  { %764 = vmatpush3.bf16.msra.mxu0 %v876_v21  ;;  %827 = vmatprep.subr.bf16.mxu1 %v904_v0 }
  0x1d   :  { %765 = vmatprep.subr.bf16.mxu0 %v877_v22 }
  0x1f   :  { %828 = vmatpush3.bf16.msra.mxu1 %v878_v30 }
  0x20   :  { %766 = vmatpush3.bf16.msra.mxu0 %v879_v31  ;;  %833 = vmatprep.subr.bf16.mxu1 %v904_v0 }
  0x21   :  { %782 = vmatprep.subr.bf16.mxu0 %v880_v39 }
  0x22   :  { %830 = vmatmul.mubr.bf16.vlgmr.msra.gmra.mxu1 %v51_v41 }
  0x23   :  { %277 = vmatmul.mubr.bf16.vlgmr.msra.gmra.mxu0 %v49_v43  ;;  %834 = vmatpush3.bf16.msra.mxu1 %v881_v40 }
  0x24   :  { %783 = vmatpush3.bf16.msra.mxu0 %v882_v42  ;;  %835 = vmatprep.subr.bf16.mxu1 %v904_v0 }
  0x25   :  { %784 = vmatprep.subr.bf16.mxu0 %v883_v44  ;;  %849 = vmatprep.mubr.msk.bf16.mxu1 %vm905_vm0, %v904_v0 }
  0x27   :  { %836 = vmatpush3.bf16.msra.mxu1 %v884_v45 }
  0x28   :  { %837 = vmatprep.subr.bf16.mxu1 %v904_v0  ;;  %785 = vmatpush3.bf16.msra.mxu0 %v885_v46 }
  0x29   :  { %786 = vmatprep.subr.bf16.mxu0 %v886_v47  ;;  %v740_v47 = vld [vmem:[%s1156_s5] ss:$0 sm:$0xff] }
  0x2b   :  { %838 = vmatpush3.bf16.msra.mxu1 %v887_v48 }
  0x2c   :  { %787 = vmatpush3.bf16.msra.mxu0 %v888_v49  ;;  %839 = vmatprep.subr.bf16.mxu1 %v904_v0 }
  0x2d   :  { %788 = vmatprep.subr.bf16.mxu0 %v889_v50 }
  0x2f   :  { %840 = vmatpush3.bf16.msra.mxu1 %v890_v51  ;;  %v741_v51 = vld [vmem:[%s1157_s6] ss:$0 sm:$0xff] }
  0x30   :  { %789 = vmatpush3.bf16.msra.mxu0 %v891_v52  ;;  %841 = vmatprep.subr.bf16.mxu1 %v904_v0 }
  0x31   :  { %790 = vmatprep.subr.bf16.mxu0 %v892_v53 }
  0x33   :  { %842 = vmatpush3.bf16.msra.mxu1 %v893_v54 }
  0x34   :  { %791 = vmatpush3.bf16.msra.mxu0 %v894_v55  ;;  %843 = vmatprep.subr.bf16.mxu1 %v904_v0 }
  0x35   :  { %792 = vmatprep.subr.bf16.mxu0 %v895_v56 }
  0x37   :  { %844 = vmatpush3.bf16.msra.mxu1 %v896_v57 }
  0x38   :  { %793 = vmatpush3.bf16.msra.mxu0 %v897_v58  ;;  %845 = vmatprep.subr.bf16.mxu1 %v904_v0 }
  0x39   :  { %794 = vmatprep.subr.bf16.mxu0 %v898_v59 }
  0x3b   :  { %846 = vmatpush3.bf16.msra.mxu1 %v899_v60 }
  0x3c   :  { %795 = vmatpush3.bf16.msra.mxu0 %v900_v61  ;;  %847 = vmatprep.subr.bf16.mxu1 %v904_v0 }
  0x3d   :  { %796 = vmatprep.subr.bf16.mxu0 %v901_v62 }
  0x3f   :  { %848 = vmatpush3.bf16.msra.mxu1 %v902_v63 }
  0x40   :  { %797 = vmatpush3.bf16.msra.mxu0 %v903_v1 }
  0xe2   :  { %v319_v2 = vpop.f32.mrf.mxu1 }
  0xe3   :  { %v767_v3 = vpop.f32.mrf.mxu0 }
  0xe4   :  { %v831_v4 = vpop.f32.mrf.mxu1 }
  0xe5   :  { %v768_v5 = vpop.f32.mrf.mxu0 }
  0xe6   :  { %v769_v0 = vadd.f32 %v768_v5, %v767_v3  ;;  %v322_v6 = vpop.f32.mrf.mxu1 }
  0xe7   :  { %v770_v8 = vpop.f32.mrf.mxu0 }
  0xe8   :  { %v320_v9 = vadd.f32 %v769_v0, %v319_v2  ;;  %v832_v10 = vpop.f32.mrf.mxu1 }
  0xe9   :  { %v771_v12 = vpop.f32.mrf.mxu0 }
  0xea   :  { %v333_v13 = vmul.f32 %v710_v7, %v320_v9  ;;  %v772_v14 = vadd.f32 %v771_v12, %v770_v8 }
  0xec   :  { %v342_v15 = vadd.f32 %v711_v11, %v333_v13  ;;  %v323_v16 = vadd.f32 %v772_v14, %v322_v6 }
  0xee   :  { %v344_v17 = vmax.f32 %v342_v15, 0.0  ;;  %v334_v18 = vmul.f32 %v710_v7, %v323_v16 }
  0xf0   :  { %v349_v19 = vrot.slane %v344_v17, 7  ;;  %v343_v20 = vadd.f32 %v711_v11, %v334_v18 }
  0xf2   :  { %v345_v21 = vmax.f32 %v343_v20, 0.0  ;;  %v355_v22 = vsel %vm348_vm3, 0.0, %v349_v19 }
  0xf3   :  { %v359_v26 = vrot.slane %v355_v22, 1  ;;  %v366_v27 = vrot.slane %v355_v22, 2 }
  0xf4   :  { %v350_v23 = vrot.slane %v345_v21, 7 }
  0xf6   :  { %v356_v24 = vsel %vm348_vm3, %v350_v23, 0.0  ;;  %v351_v25 = vsel %vm348_vm3, %v349_v19, %v350_v23 }
  0xf7   :  { %v369_v28 = vrot.slane %v356_v24, 2  ;;  %v360_v29 = vrot.slane %v351_v25, 1  ;;  %v362_v30 = vrot.slane %v356_v24, 1  ;;  %v367_v31 = vrot.slane %v351_v25, 2 }
  0xf8   :  { %v738_v40 = vpack.c.bf16 %v351_v25, %v349_v19 }
  0xf9   :  { %v361_v32 = vsel %vm33_vm1, %v359_v26, %v360_v29  ;;  %v363_v33 = vsel %vm33_vm1, %v360_v29, %v362_v30  ;;  %v368_v36 = vsel %vm41_vm2, %v366_v27, %v367_v31  ;;  %v370_v37 = vsel %vm41_vm2, %v367_v31, %v369_v28 }
  0xfa   :  { %v374_v38 = vpack.c.bf16 %v363_v33, %v361_v32  ;;  %v375_v39 = vpack.c.bf16 %v370_v37, %v368_v36 }
  0xfc   :  { %600 = vmatprep.mubr.bf16.mxu0 %v374_v38  ;;  %850 = vmatmul.mubr.bf16.vlgmr.msra.gmra.mxu1 %v375_v39 }
  0xfd   :  { %739 = vmatmul.mubr.msk.bf16.vlgmr.msra.gmra.mxu0 %vm737_vm6, %v738_v40 }
 0x1bc   :  { %v643_v41 = vpop.f32.mrf.mxu1 }
 0x1bd   :  { %v798_v42 = vpop.f32.mrf.mxu0 }
 0x1be   :  { %v851_v43 = vpop.f32.mrf.mxu1 }
 0x1bf   :  { %v799_v44 = vpop.f32.mrf.mxu0 }
 0x1c0   :  { %v800_v45 = vadd.f32 %v799_v44, %v798_v42  ;;  %v646_v46 = vpop.f32.mrf.mxu1 }
 0x1c1   :  { %v801_v48 = vpop.f32.mrf.mxu0 }
 0x1c2   :  { %v644_v49 = vadd.f32 %v800_v45, %v643_v41  ;;  %v852_v50 = vpop.f32.mrf.mxu1 }
 0x1c3   :  { %v802_v52 = vpop.f32.mrf.mxu0 }
 0x1c4   :  { %v657_v53 = vmul.f32 %v740_v47, %v644_v49  ;;  %v803_v54 = vadd.f32 %v802_v52, %v801_v48 }
 0x1c6   :  { %v666_v55 = vadd.f32 %v741_v51, %v657_v53  ;;  %v647_v56 = vadd.f32 %v803_v54, %v646_v46 }
 0x1c8   :  { %v658_v57 = vmul.f32 %v740_v47, %v647_v56  ;;  %v668_v58 = vadd.f32 %v666_v55, %v1038_v34 }
 0x1ca   :  { %v667_v59 = vadd.f32 %v741_v51, %v658_v57  ;;  %v670_v61 = vmax.f32 %v668_v58, 0.0 }
 0x1cc   :  { %v669_v60 = vadd.f32 %v667_v59, %v1041_v35 }
 0x1ce   :  { %v671_v62 = vmax.f32 %v669_v60, 0.0 }
 0x1d0   :  { %v749_v63 = vpack.c.bf16 %v671_v62, %v670_v61 }
 0x1d2   :  { %750 = vst [vmem:[%s1158_s7] sm:$0xff] %v749_v63  }

</bundles_post_ra>
